<compile_context>
chip_gen: v7x
topology: tpu7x:2x2x1
jax: 0.10.0
libtpu: 0.0.40
codegen_flags: <defaults>
</compile_context>

<pallas_src>
import functools
import math

import jax
import jax.numpy as jnp
from jax import lax
from jax.experimental import pallas as pl
from jax.experimental.pallas import tpu as pltpu


# --------------------------------------------------------------------------- #
# Generation-aware scoped-VMEM budget.
# --------------------------------------------------------------------------- #
@functools.lru_cache(maxsize=None)
def _vmem_limit_bytes():
    try:
        cap = int(pltpu.get_tpu_info().vmem_capacity_bytes)
        # ~96 MiB on v5e/v6e (128 MiB physical), 48 MiB on v7x (64 MiB physical).
        return min(cap * 3 // 4, 100 * 1024 * 1024)
    except Exception:
        return 48 * 1024 * 1024          # safe on every generation


def _pick_tile(dim, preferred, align=128):
    """Largest `align`-multiple divisor of `dim` that is <= preferred; else full dim."""
    if dim <= preferred:
        return dim
    t = (preferred // align) * align
    while t >= align:
        if dim % t == 0:
            return t
        t -= align
    # TODO(synk): pad inputs to a tile multiple instead of this full-extent fallback.
    return dim


# --------------------------------------------------------------------------- #
# Tiled linear kernel: y = x @ w + b   (w is already transposed to (K, N))
# --------------------------------------------------------------------------- #
def _linear_kernel(x_ref, w_ref, b_ref, o_ref, acc_ref):
    @pl.when(pl.program_id(2) == 0)
    def _():
        acc_ref[...] = jnp.zeros(acc_ref.shape, acc_ref.dtype)

    # bf16 MXU operands (w is pre-cast; x cast in-kernel), f32 accumulation.
    acc_ref[...] += jnp.dot(x_ref[...].astype(w_ref.dtype), w_ref[...],
                            preferred_element_type=jnp.float32)

    @pl.when(pl.program_id(2) == pl.num_programs(2) - 1)
    def _():
        o_ref[...] = (acc_ref[...] + b_ref[...].astype(jnp.float32)).astype(o_ref.dtype)


def _linear(x2d, w, b, *, out_dtype=None, tm=256, tn=256, tk=512):
    """x2d: (M, K); w: (K, N) pre-transposed; b: (1, N) f32  ->  (M, N)."""
    M, K = x2d.shape
    N = w.shape[1]
    out_dtype = out_dtype if out_dtype is not None else x2d.dtype
    tm, tn, tk = _pick_tile(M, tm), _pick_tile(N, tn), _pick_tile(K, tk)
    grid = (M // tm, N // tn, K // tk)

    return pl.pallas_call(
        _linear_kernel,
        out_shape=jax.ShapeDtypeStruct((M, N), out_dtype),
        grid_spec=pltpu.PrefetchScalarGridSpec(
            num_scalar_prefetch=0,
            grid=grid,
            in_specs=[pl.BlockSpec((tm, tk), lambda i, j, k: (i, k)),
                      pl.BlockSpec((tk, tn), lambda i, j, k: (k, j)),
                      pl.BlockSpec((1, tn), lambda i, j, k: (0, j))],
            out_specs=pl.BlockSpec((tm, tn), lambda i, j, k: (i, j)),
            scratch_shapes=[pltpu.VMEM((tm, tn), jnp.float32)]),
        compiler_params=pltpu.CompilerParams(
            dimension_semantics=("parallel", "parallel", "arbitrary"),
            vmem_limit_bytes=_vmem_limit_bytes()),
    )(x2d, w, b)


# --------------------------------------------------------------------------- #
# Flash attention (causal, online softmax), reading the packed QKV directly.
# --------------------------------------------------------------------------- #
def _flash_attention(qkv3, n_head, head_dim, *, block=256):
    """qkv3: (B, T, 3C) packed [Q(all heads) | K(all heads) | V(all heads)],
    head-major inside each group.  Returns y: (B, T, C) head-major channels
    (== PyTorch's y.transpose(1,2).contiguous().view(B,T,C)) -> no transposes."""
    B, T, C3 = qkv3.shape
    C = C3 // 3
    assert C == n_head * head_dim
    H = n_head
    scale = 1.0 / math.sqrt(head_dim)

    t = _pick_tile(T, block)                    # TQ == TK
    nq = T // t

    # Lower-triangular (qi, ki) schedule: only tiles that do real work exist.
    pairs = [(qi, ki) for qi in range(nq) for ki in range(qi + 1)]
    qi_tbl = jnp.asarray([p[0] for p in pairs], dtype=jnp.int32)
    ki_tbl = jnp.asarray([p[1] for p in pairs], dtype=jnp.int32)
    n_pairs = len(pairs)

    def kernel(qi_t, ki_t, q_ref, k_ref, v_ref, o_ref, m_sc, l_sc, acc_sc):
        pidx = pl.program_id(2)
        qi = qi_t[pidx]
        ki = ki_t[pidx]

        @pl.when(ki == 0)                       # first kv tile of this q row
        def _():
            m_sc[...] = jnp.full(m_sc.shape, -jnp.inf, m_sc.dtype)
            l_sc[...] = jnp.zeros(l_sc.shape, l_sc.dtype)
            acc_sc[...] = jnp.zeros(acc_sc.shape, acc_sc.dtype)

        q = q_ref[0]                            # (t, Dh), bf16 activations
        k = k_ref[0]                            # (t, Dh)
        # QK^T on the MXU (no in-kernel transpose), f32 result.
        s = lax.dot_general(q, k, (((1,), (1,)), ((), ())),
                            preferred_element_type=jnp.float32)
        s = s * scale                           # scale in f32, after the bf16 matmul

        # Global-index causal mask: correct for any tile pair; on off-diagonal
        # lower tiles the where() is a no-op that hides under MXU slack.
        row = qi * t + lax.broadcasted_iota(jnp.int32, s.shape, 0)
        col = ki * t + lax.broadcasted_iota(jnp.int32, s.shape, 1)
        s = jnp.where(col <= row, s, -jnp.inf)

        m_prev = m_sc[...]
        m_new = jnp.maximum(m_prev, jnp.max(s, axis=-1, keepdims=True))
        alpha = jnp.exp(m_prev - m_new)
        p = jnp.exp(s - m_new)
        l_sc[...] = alpha * l_sc[...] + jnp.sum(p, axis=-1, keepdims=True)
        acc_sc[...] = alpha * acc_sc[...] + jnp.dot(
            p.astype(v_ref.dtype), v_ref[0], preferred_element_type=jnp.float32)
        m_sc[...] = m_new

        @pl.when(ki == qi)                      # last kv tile of this q row
        def _():
            o_ref[0] = (acc_sc[...] / l_sc[...]).astype(o_ref.dtype)

    # index_maps slice q/k/v straight out of the packed (B, T, 3C) activation;
    # the last-axis block index is in head_dim units: q@h, k@H+h, v@2H+h.
    q_map = lambda b, h, p, qi_t, ki_t: (b, qi_t[p], h)
    k_map = lambda b, h, p, qi_t, ki_t: (b, ki_t[p], H + h)
    v_map = lambda b, h, p, qi_t, ki_t: (b, ki_t[p], 2 * H + h)
    o_map = lambda b, h, p, qi_t, ki_t: (b, qi_t[p], h)

    return pl.pallas_call(
        kernel,
        out_shape=jax.ShapeDtypeStruct((B, T, C), qkv3.dtype),
        grid_spec=pltpu.PrefetchScalarGridSpec(
            num_scalar_prefetch=2,
            grid=(B, H, n_pairs),               # B leading: clean megacore split
            in_specs=[pl.BlockSpec((1, t, head_dim), q_map),
                      pl.BlockSpec((1, t, head_dim), k_map),
                      pl.BlockSpec((1, t, head_dim), v_map)],
            out_specs=pl.BlockSpec((1, t, head_dim), o_map),
            scratch_shapes=[pltpu.VMEM((t, 1), jnp.float32),          # m (running max)
                            pltpu.VMEM((t, 1), jnp.float32),          # l (running sum)
                            pltpu.VMEM((t, head_dim), jnp.float32)]), # acc
        compiler_params=pltpu.CompilerParams(
            dimension_semantics=("parallel", "parallel", "arbitrary"),
            vmem_limit_bytes=_vmem_limit_bytes()),
    )(qi_tbl, ki_tbl, qkv3, qkv3, qkv3)


# --------------------------------------------------------------------------- #
# Full module forward
# --------------------------------------------------------------------------- #
def causal_self_attention(x, params, n_head, *, compute_dtype=jnp.bfloat16):
    """x: (B, T, C); params: nn.Linear-style weights (out,in) and biases (out,)."""
    B, T, C = x.shape
    assert C % n_head == 0
    Dh = C // n_head
    # Lane-aligned per-head slices let the flash kernel address q/k/v inside the
    # packed qkv activation with BlockSpec index_maps (no HBM transposes).
    assert Dh % 128 == 0, "head_dim must be a multiple of 128 (lane width)"
    # TODO(synk): support head_dim < 128 via a separate (B*H, T, Dh) layout path.

    cdt = compute_dtype
    # Packed, pre-transposed (C, 3C) QKV weight, bf16 MXU operands, f32 bias.
    # The attention scale is NOT folded into the bf16 Q weights; it is applied
    # in f32 after QK^T inside the flash kernel.
    w_qkv = jnp.concatenate(
        [params['wq'], params['wk'], params['wv']], axis=0).T.astype(cdt)   # (C, 3C)
    b_qkv = jnp.concatenate(
        [params['bq'], params['bk'], params['bv']]).reshape(1, 3 * C).astype(jnp.float32)
    w_proj = params['wp'].T.astype(cdt)                                     # (C, C)
    b_proj = params['bp'].reshape(1, C).astype(jnp.float32)

    x2d = x.reshape(B * T, C)
    qkv = _linear(x2d, w_qkv, b_qkv, out_dtype=cdt)     # (B*T, 3C), one fused matmul
    qkv3 = qkv.reshape(B, T, 3 * C)                     # free (no transpose)

    y = _flash_attention(qkv3, n_head, Dh)              # (B, T, C), head-major channels

    out = _linear(y.reshape(B * T, C), w_proj, b_proj, out_dtype=x.dtype)
    # TODO(synk): attn_drop / resid_drop (nn.Dropout) are identity in this
    # deterministic eval-mode forward.
    return out.reshape(B, T, C)


# --------------------------------------------------------------------------- #
# Pure-JAX reference and test harness
# --------------------------------------------------------------------------- #
def _reference(x, params, n_head):
    B, T, C = x.shape
    Dh = C // n_head
    q = x @ params['wq'].T + params['bq']
    k = x @ params['wk'].T + params['bk']
    v = x @ params['wv'].T + params['bv']
    q = q.reshape(B, T, n_head, Dh).transpose(0, 2, 1, 3)
    k = k.reshape(B, T, n_head, Dh).transpose(0, 2, 1, 3)
    v = v.reshape(B, T, n_head, Dh).transpose(0, 2, 1, 3)
    att = (q @ k.transpose(0, 1, 3, 2)) * (1.0 / math.sqrt(Dh))
    mask = jnp.tril(jnp.ones((T, T)))[None, None]
    att = jnp.where(mask == 0, -jnp.inf, att)
    att = jax.nn.softmax(att, axis=-1)
    y = (att @ v).transpose(0, 2, 1, 3).reshape(B, T, C)
    return y @ params['wp'].T + params['bp']


def _init_params(key, d_model):
    bound = 1.0 / math.sqrt(d_model)
    keys = jax.random.split(key, 8)
    u = lambda k, shape: jax.random.uniform(k, shape, jnp.float32, -bound, bound)
    return {
        'wq': u(keys[0], (d_model, d_model)), 'bq': u(keys[1], (d_model,)),
        'wk': u(keys[2], (d_model, d_model)), 'bk': u(keys[3], (d_model,)),
        'wv': u(keys[4], (d_model, d_model)), 'bv': u(keys[5], (d_model,)),
        'wp': u(keys[6], (d_model, d_model)), 'bp': u(keys[7], (d_model,)),
    }


if __name__ == "__main__":
    # Small but tiling-exercising config: T=512 -> two 256-wide q tiles and a
    # 3-entry lower-triangular pair schedule per (batch, head); Dh=128 lane-dense.
    B, T, d_model, n_head = 2, 512, 256, 2

    key = jax.random.PRNGKey(0)
    kx, kp = jax.random.split(key)
    x = jax.random.normal(kx, (B, T, d_model), jnp.float32)
    params = _init_params(kp, d_model)

    out = jax.block_until_ready(causal_self_attention(x, params, n_head))
    ref = _reference(x, params, n_head)

    assert out.shape == (B, T, d_model)
    assert out.dtype == x.dtype
    max_err = float(jnp.max(jnp.abs(out - ref)))
    # bf16 MXU operands with f32 accumulation -> bf16-appropriate tolerance.
    assert jnp.allclose(out, ref, atol=2e-2, rtol=2e-2), (
        f"mismatch vs reference (max abs err {max_err})")

    print("KERNEL_OK")
</pallas_src>

<mosaic_0001>
module attributes {stable_mosaic.version = 11 : i64} {
  func.func @_linear_kernel(%arg0: i32, %arg1: i32, %arg2: i32, %arg3: memref<256x256xf32, #tpu.memory_space<vmem>>, %arg4: memref<256x256xbf16, #tpu.memory_space<vmem>>, %arg5: memref<1x256xf32, #tpu.memory_space<vmem>>, %arg6: memref<256x256xbf16, #tpu.memory_space<vmem>>, %arg7: memref<256x256xf32, #tpu.memory_space<vmem>>) attributes {dimension_semantics = [#tpu.dimension_semantics<parallel>, #tpu.dimension_semantics<parallel>, #tpu.dimension_semantics<arbitrary>], iteration_bounds = array<i64: 4, 3, 1>, scalar_prefetch = 0 : i64, scratch_operands = 1 : i64, tpu.core_type = #tpu.core_type<tc>, window_params = [{transform_indices = @transform_0, window_bounds = array<i64: 256, 256>}, {transform_indices = @transform_1, window_bounds = array<i64: 256, 256>}, {transform_indices = @transform_2, window_bounds = array<i64: 1, 256>}, {transform_indices = @transform_3, window_bounds = array<i64: 256, 256>}]} {
    %c0_i32 = arith.constant 0 : i32
    %0 = arith.cmpi eq, %arg2, %c0_i32 : i32
    %1 = arith.extui %0 : i1 to i32
    %c0_i32_0 = arith.constant 0 : i32
    %2 = arith.cmpi ne, %1, %c0_i32_0 : i32
    scf.if %2 {
      %cst_10 = arith.constant 0.000000e+00 : f32
      %13 = vector.broadcast %cst_10 : f32 to vector<256x256xf32>
      %c0_11 = arith.constant 0 : index
      %c0_12 = arith.constant 0 : index
      %14 = vector.load %arg7[%c0_11, %c0_12] : memref<256x256xf32, #tpu.memory_space<vmem>>, vector<256x256xf32>
      tpu.vector_store %arg7[%c0_11, %c0_12], %13 {strides = array<i32>} : memref<256x256xf32, #tpu.memory_space<vmem>>, vector<256x256xf32>,
    } else {
    }
    %c0 = arith.constant 0 : index
    %c0_1 = arith.constant 0 : index
    %3 = vector.load %arg7[%c0, %c0_1] : memref<256x256xf32, #tpu.memory_space<vmem>>, vector<256x256xf32>
    %c0_2 = arith.constant 0 : index
    %c0_3 = arith.constant 0 : index
    %4 = vector.load %arg3[%c0_2, %c0_3] : memref<256x256xf32, #tpu.memory_space<vmem>>, vector<256x256xf32>
    %5 = arith.truncf %4 : vector<256x256xf32> to vector<256x256xbf16>
    %c0_4 = arith.constant 0 : index
    %c0_5 = arith.constant 0 : index
    %6 = vector.load %arg4[%c0_4, %c0_5] : memref<256x256xbf16, #tpu.memory_space<vmem>>, vector<256x256xbf16>
    %cst = arith.constant dense<0.000000e+00> : vector<256x256xf32>
    %7 = tpu.matmul %5, %6, %cst {dimension_numbers = #tpu.dot_dimension_numbers<[1], [0], [0], [1], [0, 0, 1, 1], [], []>} : vector<256x256xbf16>, vector<256x256xbf16>, vector<256x256xf32> -> vector<256x256xf32>
    %8 = arith.addf %3, %7 : vector<256x256xf32>
    %c0_6 = arith.constant 0 : index
    %c0_7 = arith.constant 0 : index
    %9 = vector.load %arg7[%c0_6, %c0_7] : memref<256x256xf32, #tpu.memory_space<vmem>>, vector<256x256xf32>
    tpu.vector_store %arg7[%c0_6, %c0_7], %8 {strides = array<i32>} : memref<256x256xf32, #tpu.memory_space<vmem>>, vector<256x256xf32>,
    %c0_i32_8 = arith.constant 0 : i32
    %10 = arith.cmpi eq, %arg2, %c0_i32_8 : i32
    %11 = arith.extui %10 : i1 to i32
    %c0_i32_9 = arith.constant 0 : i32
    %12 = arith.cmpi ne, %11, %c0_i32_9 : i32
    scf.if %12 {
      %c0_10 = arith.constant 0 : index
      %c0_11 = arith.constant 0 : index
      %13 = vector.load %arg7[%c0_10, %c0_11] : memref<256x256xf32, #tpu.memory_space<vmem>>, vector<256x256xf32>
      %c0_12 = arith.constant 0 : index
      %c0_13 = arith.constant 0 : index
      %14 = vector.load %arg5[%c0_12, %c0_13] : memref<1x256xf32, #tpu.memory_space<vmem>>, vector<1x256xf32>
      %15 = vector.broadcast %14 : vector<1x256xf32> to vector<256x256xf32>
      %16 = arith.addf %13, %15 : vector<256x256xf32>
      %17 = arith.truncf %16 : vector<256x256xf32> to vector<256x256xbf16>
      %c0_14 = arith.constant 0 : index
      %c0_15 = arith.constant 0 : index
      %18 = vector.load %arg6[%c0_14, %c0_15] : memref<256x256xbf16, #tpu.memory_space<vmem>>, vector<256x256xbf16>
      tpu.vector_store %arg6[%c0_14, %c0_15], %17 {strides = array<i32>} : memref<256x256xbf16, #tpu.memory_space<vmem>>, vector<256x256xbf16>,
    } else {
    }
    return
  }
  func.func @transform_0(%arg0: i32, %arg1: i32, %arg2: i32) -> (i32, i32) {
    %c0_i32 = arith.constant 0 : i32
    return %arg0, %arg2 : i32, i32
  }
  func.func @transform_1(%arg0: i32, %arg1: i32, %arg2: i32) -> (i32, i32) {
    %c0_i32 = arith.constant 0 : i32
    return %arg2, %arg1 : i32, i32
  }
  func.func @transform_2(%arg0: i32, %arg1: i32, %arg2: i32) -> (i32, i32) {
    %c0_i32 = arith.constant 0 : i32
    %c0_i32_0 = arith.constant 0 : i32
    return %c0_i32, %arg1 : i32, i32
  }
  func.func @transform_3(%arg0: i32, %arg1: i32, %arg2: i32) -> (i32, i32) {
    %c0_i32 = arith.constant 0 : i32
    return %arg0, %arg1 : i32, i32
  }
}

</mosaic_0001>

<bundles_post_ra>
// kernel: tpu_custom_call.1
= control target key start
LH: loop header
LB: loop body
LE: loop exit
PB: predicated region body
PF: predicated region fallthrough
CT: control target
= control target key end

     0   :  { %s2778_s0 = inlined_call_operand.hbm [shape: f32[1024,256], index: 0, kind: input, shape index: {}]   ;;  %s2779_s1 = inlined_call_operand.hbm [shape: bf16[256,768], index: 1, kind: input, shape index: {}]   ;;  %s2780_s2 = inlined_call_operand.hbm [shape: f32[1,768], index: 2, kind: input, shape index: {}]   ;;  %s2781_s3 = inlined_call_operand.hbm [shape: bf16[1024,768], index: 3, kind: output, shape index: {}]  }
   0x1   :  { %2797 = sst [smem:[#allocation25_spill]] %s2778_s0 }
   0x2   :  { %2798 = sst [smem:[#allocation26_spill]] %s2779_s1 }
   0x3   :  { %2799 = sst [smem:[#allocation27_spill]] %s2781_s3 }
   0x4   :  { %8 = vsyncpa [#allocation4], 0 }
   0x5   :  { %10 = vsyncpa [#allocation4 + $0x1], 0 }
   0x6   :  { %11 = vsyncpa [#allocation7], 0 }
   0x7   :  { %13 = vsyncpa [#allocation7 + $0x1], 0 }
   0x8   :  { %14 = vsyncpa [#allocation5], 0 }
   0x9   :  { %16 = vsyncpa [#allocation5 + $0x1], 0  ;;  %s2191_s12 = smov 0   ;;  %s2193_s13 = smov 0  }
   0xa   :  { %s2195_s14 = smov 0   ;;  %s2197_s15 = smov 0  }
   0xb   :  { %s2199_s16 = smov 0   ;;  %s2201_s17 = smov 0  }
   0xc   :  { %s2203_s18 = smov 0   ;;  %s2205_s19 = smov 0  }
   0xd   :  { %s2207_s20 = smov 0   ;;  %s2209_s21 = smov 0  }
   0xe   :  { %s2211_s22 = smov 0   ;;  %s2213_s23 = smov 0  }
   0xf   :  { %s2215_s24 = smov 0   ;;  %s2217_s25 = smov 0  }
  0x10 LB: > { %2800 = sst [smem:[#allocation13_spill]] %s2113_s14  ;;  %s37_s26 = sadd.s32 1, %s2149_s23  ;;  %s2157_s25 = sphi %s2217_s25, %s22_s25   ;;  %s2153_s24 = sphi %s2215_s24, %s2849_s24   ;;  %s2149_s23 = sphi %s2213_s23, %s2857_s23   ;;  %s2145_s22 = sphi %s2211_s22, %s2847_s22   ;;  %s2141_s21 = sphi %s2209_s21, %s2856_s21   ;;  %s2137_s20 = sphi %s2207_s20, %s2846_s20   ;;  %s2133_s19 = sphi %s2205_s19, %s2855_s19   ;;  %s2129_s18 = sphi %s2203_s18, %s2854_s18   ;;  %s2125_s17 = sphi %s2201_s17, %s2844_s17   ;;  %s2121_s16 = sphi %s2199_s16, %s2853_s16   ;;  %s2117_s15 = sphi %s2197_s15, %s2852_s15   ;;  %s2113_s14 = sphi %s2195_s14, %s2842_s14   ;;  %s2109_s13 = sphi %s2193_s13, %s2851_s13   ;;  %s2105_s12 = sphi %s2191_s12, %s2850_s12  }
  0x11   : > { %2801 = sst [smem:[#allocation14_spill]] %s2125_s17  ;;  %p2784_p0 = scmp.eq.s32.totalorder %s2157_s25, 0 }
  0x12   : > { %2802 = sst [smem:[#allocation15_spill]] %s2137_s20  ;;  %p2265_p1 = scmp.ge.s32.totalorder %s37_s26, 3 }
  0x13   : > { %2803 = sst [smem:[#allocation16_spill]] %s2141_s21  ;;  %p85_p2 = scmp.ne.s32.totalorder %s2125_s17, %s2121_s16 }
  0x14   : > { %2804 = sst [smem:[#allocation17_spill]] %s2145_s22  ;;  %p2783_p4 = scmp.lt.s32.totalorder %s2157_s25, 12 }
  0x15   : > { %2805 = sst [smem:[#allocation18_spill]] %s2153_s24  ;;  %p87_p5 = por %p85_p2, %p2784_p0 }
  0x16   : > { %s193_s29 = sand.u32 1, %s2157_s25   ;;  %s2782_s30 = sand.u32 1, %s2125_s17  }
  0x17   : > { %s1574_s4 = sshll.u32 %s2782_s30, 8  ;;  %s1658_s5 = sshll.u32 %s2149_s23, 7 }
  0x18   : > { %s2807_s1 = sld [smem:[#allocation26_spill]]  ;;  %s197_s9 = scalar_lea.vmem [#allocation6], %s1574_s4 }
  0x19   : > { %s207_s10 = sshll.u32 %s197_s9, 4  ;;  %p2289_p6 = pnand %p2783_p4, %p87_p5  ;;  %s2293_s10 = int_to_ptr.vmem [resolvable:$true] %s207_s10 }
  0x1a   : > { %s2296_s30 = scalar_lea.sflag [#allocation7], %s193_s29 }
  0x1b   : > { %p2791_p9 = pneg %p2289_p6 }
  0x1e   : > { %s2285_s8 = scalar_lea.hbm %s2807_s1, %s1658_s5  ;;  %s1922_s7 = scalar_lea.hbm %s2807_s1, 12288 }
  0x1f   : > { %s1917_s5 = scalar_lea.hbm %s2285_s8, 4096  ;;  %p1923_p12 = scmp.lt.u32.totalorder %s2285_s8, %s2807_s1 }
  0x20   : > { %p1918_p8 = scmp.ne.s32.totalorder %s2285_s8, %s1917_s5  ;;  %p1924_p13 = scmp.lt.u32.totalorder %s1922_s7, %s1917_s5 }
  0x21   : > { %p1926_p5 = scmp.lt.u32.totalorder %s1917_s5, %s2285_s8 }
  0x22   : > { %p1920_p10 = pnand %p2791_p9, %p1918_p8  ;;  %p1925_p2 = por %p1924_p13, %p1923_p12 }
  0x24   : > { %p1921_p11 = pneg %p1920_p10  ;;  %p1927_p4 = por %p1926_p5, %p1925_p2 }
  0x26   : > { %p1928_p3 = pnand %p1927_p4, %p1921_p11 }
  0x28   : > { %1931 = shalt.err (!%p1928_p3)
}
  0x29   : > { %s1932_s29 = scalar_lea.vmem %s2293_s10, 4096  ;;  %s2159_s4 = smov [#allocation6]  }
  0x2a   : > { %p1933_p8 = scmp.ne.s32.totalorder %s2293_s10, %s1932_s29  ;;  %s1937_s6 = sshll.u32 %s2159_s4, 4  ;;  %s1938_s6 = int_to_ptr.vmem [resolvable:$false] %s1937_s6 }
  0x2b   : > { %s1939_s28 = scalar_lea.vmem %s1938_s6, 8192  ;;  %p1940_p7 = scmp.lt.s32.totalorder %s2293_s10, %s1938_s6 }
  0x2c   : > { %p1935_p10 = pnand %p1933_p8, %p2791_p9  ;;  %p1941_p12 = scmp.lt.s32.totalorder %s1939_s28, %s1932_s29 }
  0x2e   : > { %p1936_p0 = pneg %p1935_p10  ;;  %p1942_p13 = por %p1941_p12, %p1940_p7 }
  0x30   : > { %p1943_p2 = pnand %p1942_p13, %p1936_p0 }
  0x32   : > { %1946 = shalt.err (!%p1943_p2)
}
  0x33   : > { %s2160_s5 = smov 384   ;;  %s2161_s7 = smov 128  }
  0x34   : > { %s2162_s9 = smov 8   ;;  %p234_p0 = scmp.lt.s32.totalorder %s2157_s25, 13 }
  0x35   : > { %1739 = dma.hbm_to_vmem [thread:$0]  (!%p2289_p6), %s2285_s8, 4096, %s2293_s10, %s2296_s30, %s2160_s5, %s2161_s7, %s2162_s9  }
  0x36   : > { %p2809_p3 = scmp.ge.s32.totalorder %s2157_s25, 1  ;;  %s2332_s4 = sadd.s32 4294967295, %s2157_s25  }
  0x37   : > { %s1567_s6 = sadd.s32 4294967294, %s2157_s25   ;;  %s2859_s26 = smov (%p2265_p1, %s37_s26), 0 }
  0x38   : > { %p2327_p4 = pnand %p2809_p3, %p234_p0  ;;  %2811 = sst [smem:[#allocation19_spill]] %s2859_s26 }
  0x39   : > { %s41_s28 = sadd.s32 1, %s2153_s24  ;;  %s50_s8 = sadd.s32 1, %s2137_s20 }
  0x3a   : > { %s2810_s29 = scalar_select %p2327_p4, 1, 0 }
  0x3b   : > { %s2861_s28 = smov (!%p2265_p1, %s41_s28), %s2153_s24  ;;  %p57_p7 = scmp.ne.s32.totalorder %s2137_s20, %s2133_s19 }
  0x3c   : > { %p63_p11 = scmp.ne.s32.totalorder %s2133_s19, %s2129_s18  ;;  %p43_p5 = scmp.ge.s32.totalorder %s2861_s28, 4 }
  0x3d   : > { %p64_p8 = scmp.eq.s32.totalorder %s2332_s4, 0  ;;  %p2812_p10 = scmp.eq.s32.totalorder %s2157_s25, 0 }
  0x3e   : > { %s74_s5 = ssub.s32 %s2149_s23, %s2859_s26  ;;  %s2863_s28 = smov (%p43_p5, %s2861_s28), 0 }
  0x3f   : > { %p2353_p12 = por %p2812_p10, %p57_p7  ;;  %2814 = sst [smem:[#allocation20_spill]] %s2863_s28 }
  0x40   : > { %p2361_p1 = por %p64_p8, %p63_p11  ;;  %p76_p13 = scmp.eq.s32.totalorder %s74_s5, 0 }
  0x41   : > { %s45_s18 = ssub.s32 %s2153_s24, %s2863_s28  ;;  %p2816_p2 = scmp.ne.s32.totalorder %s2121_s16, %s2117_s15 }
  0x42   : > { %s2815_s27 = scalar_select %p2361_p1, 1, 0 }
  0x43   : > { %p2370_p0 = por %p2816_p2, %p64_p8  ;;  %p48_p3 = scmp.eq.s32.totalorder %s45_s18, 0 }
  0x44   : > { %s129_s9 = sor.u32 %s74_s5, %s45_s18  ;;  %s2818_s1 = sadd.s32 1, %s2125_s17 }
  0x45   : > { %s2817_s7 = scalar_select %p2370_p0, 1, 0 }
  0x46   : > { %s2377_s26 = scalar_select %p76_p13, %s2125_s17, %s2818_s1  }
  0x47   : > { %s2380_s3 = scalar_select %p48_p3, %s2137_s20, %s50_s8  }
  0x48   : > { %2819 = sst [smem:[#allocation21_spill]] %s2377_s26  ;;  %p130_p7 = scmp.eq.s32.totalorder %s129_s9, 0 }
  0x49   : > { %2820 = sst [smem:[#allocation22_spill]] %s2380_s3  ;;  %s132_s21 = sadd.s32 1, %s2113_s14 }
  0x4a   : > { %p142_p11 = scmp.ne.s32.totalorder %s2113_s14, %s2109_s13  ;;  %p143_p5 = scmp.eq.s32.totalorder %s2332_s4, 11 }
  0x4b   : > { %s2387_s15 = scalar_select %p130_p7, %s2113_s14, %s132_s21  }
  0x4c   : > { %p2389_p8 = por %p143_p5, %p142_p11  ;;  %p148_p10 = scmp.ne.s32.totalorder %s2109_s13, %s2105_s12 }
  0x4d   : > { %2821 = sst [smem:[#allocation23_spill]] %s2387_s15  ;;  %p149_p2 = scmp.eq.s32.totalorder %s1567_s6, 11 }
  0x4e   : > { %s2822_s28 = scalar_select %p2389_p8, 1, 0 }
  0x4f   : > { %s169_s5 = sand.u32 1, %s2137_s20   ;;  %p2396_p13 = por %p149_p2, %p148_p10 }
  0x50   : > { %s1570_s1 = sshll.u32 %s169_s5, 9  ;;  %s1657_s18 = sshll.u32 %s2153_s24, 13 }
  0x51   : > { %s2823_s8 = scalar_select %p2396_p13, 1, 0 }
  0x52   : > { %s173_s9 = scalar_lea.vmem [#allocation3], %s1570_s1  ;;  %s2825_s0 = sld [smem:[#allocation25_spill]] }
  0x53   : > { %2824 = sst [smem:[#allocation24_spill]] %s2823_s8  ;;  %s183_s3 = sshll.u32 %s173_s9, 4  ;;  %s2406_s3 = int_to_ptr.vmem [resolvable:$true] %s183_s3 }
  0x54   : > { %p2826_p3 = scmp.lt.s32.totalorder %s2157_s25, 12  ;;  %s2828_s24 = sand.u32 1, %s2125_s17  }
  0x55   : > { %s2418_s1 = sshll.u32 %s2828_s24, 1  ;;  %s2420_s22 = scalar_lea.sflag [#allocation4], %s169_s5 }
  0x56   : > { %p2412_p7 = pnand %p2826_p3, %p2353_p12 }
  0x58   : > { %s2404_s21 = scalar_lea.hbm %s2825_s0, %s1657_s18  ;;  %p1949_p5 = pneg %p2412_p7 }
  0x59   : > { %s1947_s26 = scalar_lea.hbm %s2404_s21, 8192  ;;  %s1952_s9 = scalar_lea.hbm %s2825_s0, 32768 }
  0x5a   : > { %p1948_p11 = scmp.ne.s32.totalorder %s2404_s21, %s1947_s26  ;;  %p1953_p12 = scmp.lt.u32.totalorder %s2404_s21, %s2825_s0 }
  0x5b   : > { %p1954_p3 = scmp.lt.u32.totalorder %s1952_s9, %s1947_s26  ;;  %p1956_p13 = scmp.lt.u32.totalorder %s1947_s26, %s2404_s21 }
  0x5c   : > { %p1950_p10 = pnand %p1949_p5, %p1948_p11 }
  0x5d   : > { %p1955_p9 = por %p1954_p3, %p1953_p12 }
  0x5e   : > { %p1951_p2 = pneg %p1950_p10 }
  0x5f   : > { %p1957_p8 = por %p1956_p13, %p1955_p9 }
  0x61   : > { %p1958_p0 = pnand %p1957_p8, %p1951_p2 }
  0x63   : > { %1961 = shalt.err (!%p1958_p0)
}
  0x64   : > { %s1962_s24 = scalar_lea.vmem %s2406_s3, 8192  ;;  %s2163_s5 = smov [#allocation3]  }
  0x65   : > { %p1963_p11 = scmp.ne.s32.totalorder %s2406_s3, %s1962_s24  ;;  %s1967_s10 = sshll.u32 %s2163_s5, 4  ;;  %s1968_s10 = int_to_ptr.vmem [resolvable:$false] %s1967_s10 }
  0x66   : > { %s1969_s17 = scalar_lea.vmem %s1968_s10, 16384  ;;  %p1970_p4 = scmp.lt.s32.totalorder %s2406_s3, %s1968_s10 }
  0x67   : > { %p1965_p10 = pnand %p1963_p11, %p1949_p5  ;;  %p1971_p12 = scmp.lt.s32.totalorder %s1969_s17, %s1962_s24 }
  0x69   : > { %p1966_p1 = pneg %p1965_p10  ;;  %p1972_p3 = por %p1971_p12, %p1970_p4 }
  0x6b   : > { %p1973_p9 = pnand %p1972_p3, %p1966_p1 }
  0x6d   : > { %1976 = shalt.err (!%p1973_p9)
}
  0x6e   : > { %s2164_s20 = smov 256   ;;  %s2165_s26 = smov 16  }
  0x6f   : > { %1736 = dma.hbm_to_vmem [thread:$0]  (!%p2412_p7), %s2404_s21, 8192, %s2406_s3, %s2420_s22, %s2164_s20, %s2164_s20, %s2165_s26  }
  0x70   : > { %s1659_s18 = sshll.u32 %s2149_s23, 5  ;;  %s221_s9 = scalar_lea.vmem [#allocation8], %s2418_s1 }
  0x71   : > { %s229_s5 = sshll.u32 %s221_s9, 4  ;;  %s227_s24 = scalar_lea.hbm %s2780_s2, %s1659_s18  ;;  %s230_s5 = int_to_ptr.vmem [resolvable:$true] %s229_s5 }
  0x72   : > { %s1977_s17 = scalar_lea.hbm %s227_s24, 32  ;;  %p2829_p1 = pneg %p2289_p6 }
  0x73   : > { %p1978_p4 = scmp.ne.s32.totalorder %s227_s24, %s1977_s17  ;;  %s1982_s8 = scalar_lea.hbm %s2780_s2, 96 }
  0x74   : > { %p1983_p13 = scmp.lt.u32.totalorder %s227_s24, %s2780_s2  ;;  %p1984_p7 = scmp.lt.u32.totalorder %s1982_s8, %s1977_s17 }
  0x75   : > { %p1980_p0 = pnand %p1978_p4, %p2829_p1  ;;  %p1986_p2 = scmp.lt.u32.totalorder %s1977_s17, %s227_s24 }
  0x76   : > { %p1985_p5 = por %p1984_p7, %p1983_p13 }
  0x77   : > { %p1981_p8 = pneg %p1980_p0 }
  0x78   : > { %p1987_p11 = por %p1986_p2, %p1985_p5 }
  0x7a   : > { %p1988_p10 = pnand %p1987_p11, %p1981_p8 }
  0x7c   : > { %1991 = shalt.err (!%p1988_p10)
}
  0x7d   : > { %s1992_s0 = scalar_lea.vmem %s230_s5, 32  ;;  %p2830_p3 = pmov %p2829_p1 }
  0x7e   : > { %p1993_p12 = scmp.ne.s32.totalorder %s230_s5, %s1992_s0  ;;  %s2166_s21 = smov [#allocation8]  }
  0x7f   : > { %s1997_s14 = sshll.u32 %s2166_s21, 4  ;;  %s1998_s14 = int_to_ptr.vmem [resolvable:$false] %s1997_s14 }
  0x80   : > { %p1995_p9 = pnand %p1993_p12, %p2830_p3  ;;  %s1999_s15 = scalar_lea.vmem %s1998_s14, 64 }
  0x81   : > { %p2000_p1 = scmp.lt.s32.totalorder %s230_s5, %s1998_s14  ;;  %p2001_p0 = scmp.lt.s32.totalorder %s1999_s15, %s1992_s0 }
  0x82   : > { %p1996_p4 = pneg %p1995_p9 }
  0x83   : > { %p2002_p7 = por %p2001_p0, %p2000_p1 }
  0x85   : > { %p2003_p13 = pnand %p2002_p7, %p1996_p4 }
  0x87   : > { %2006 = shalt.err (!%p2003_p13)
}
  0x88   : > { %1742 = dma.hbm_to_vmem [thread:$0]  (!%p2289_p6), %s227_s24, 32, %s230_s5, %s2296_s30  }
  0x89   : > { %p2831_p8 = scmp.ne.s32.totalorder %s2810_s29, 0 }
  0x8a   : > { %s240_s8 = sand.u32 (!%p2831_p8), 1, %s2133_s19   ;;  %p2832_p5 = scmp.ne.s32.totalorder (!%p2831_p8), %s2815_s27, 0 }
  0x8b   : > { %238 = sbr.rel (%p2831_p8) target bundleno = 508 (0x1fc), region = 32  ;;  %s1581_s1 = sshll.u32 (!%p2831_p8), %s240_s8, 9 }
  0x8c   : > { %s241_s22 = scalar_lea.sflag (!%p2831_p8), [#allocation4], %s240_s8  ;;  %s2471_s20 = scalar_lea.vmem (!%p2831_p8), [#allocation3], %s1581_s1 }
  0x92   : > { %2092 = dma.done.wait (%p2832_p5), %s241_s22, 8192  }
  0x93   : > { %2094 = vsyncadd (%p2832_p5), %s241_s22, 4294959104  ;;  %s249_s30 = sand.u32 1, %s2332_s4   ;;  %s251_s11 = sand.u32 1, %s2121_s16  }
  0x94   : > { %s1582_s29 = sshll.u32 %s251_s11, 8  ;;  %s250_s26 = scalar_lea.sflag [#allocation7], %s249_s30 }
  0x95   : > { %s2481_s18 = scalar_lea.vmem [#allocation6], %s1582_s29  ;;  %p2833_p6 = scmp.ne.s32.totalorder %s2817_s7, 0 }
  0x97   : > { %2096 = dma.done.wait (%p2833_p6), %s250_s26, 4128  }
  0x98   : > { %2098 = vsyncadd (%p2833_p6), %s250_s26, 4294963168  ;;  %v1869_v0 = vld [vmem:[%s2481_s18 + $0x4] ss:$8 sps:$4 sm:$0xff]   ;;  %v1871_v1 = vld [vmem:[%s2481_s18] ss:$8 sps:$4 sm:$0xff]   ;;  %s1583_s4 = sshll.u32 %s251_s11, 1 }
  0x99   : > { %722 = vmatprep.subr.bf16.mxu0 %v1869_v0  ;;  %1692 = vmatprep.subr.bf16.mxu1 %v1869_v0  ;;  %v1872_v2 = vld [vmem:[%s2481_s18 + $0x14] ss:$8 sps:$4 sm:$0xff]   ;;  %v1874_v3 = vld [vmem:[%s2481_s18 + $0x10] ss:$8 sps:$4 sm:$0xff]   ;;  %v1875_v4 = vld [vmem:[%s2481_s18 + $0x24] ss:$8 sps:$4 sm:$0xff]  }
  0x9a   : > { %723 = vmatpush1.bf16.msra.mxu0 %v1871_v1  ;;  %1708 = vmatpush1.bf16.msra.mxu1 %v1871_v1  ;;  %v1877_v5 = vld [vmem:[%s2481_s18 + $0x20] ss:$8 sps:$4 sm:$0xff]   ;;  %v1878_v6 = vld [vmem:[%s2481_s18 + $0x34] ss:$8 sps:$4 sm:$0xff]   ;;  %v1880_v7 = vld [vmem:[%s2481_s18 + $0x30] ss:$8 sps:$4 sm:$0xff]  }
  0x9b   : > { %724 = vmatprep.subr.bf16.mxu0 %v1872_v2  ;;  %1693 = vmatprep.subr.bf16.mxu1 %v1872_v2  ;;  %v1881_v8 = vld [vmem:[%s2481_s18 + $0x44] ss:$8 sps:$4 sm:$0xff]   ;;  %v1883_v9 = vld [vmem:[%s2481_s18 + $0x40] ss:$8 sps:$4 sm:$0xff]   ;;  %v1884_v10 = vld [vmem:[%s2481_s18 + $0x54] ss:$8 sps:$4 sm:$0xff]  }
  0x9c   : > { %v1886_v11 = vld [vmem:[%s2481_s18 + $0x50] ss:$8 sps:$4 sm:$0xff]   ;;  %v1887_v12 = vld [vmem:[%s2481_s18 + $0x64] ss:$8 sps:$4 sm:$0xff]   ;;  %v1889_v18 = vld [vmem:[%s2481_s18 + $0x60] ss:$8 sps:$4 sm:$0xff]  }
  0x9d   : > { %v435_v13 = vld [vmem:[%s2471_s20 + $0x8] sm:$0xff]  ;;  %v437_v14 = vld [vmem:[%s2471_s20 + $0x18] sm:$0xff]  ;;  %v434_v38 = vld [vmem:[%s2471_s20] sm:$0xff]  ;;  %s262_s27 = scalar_lea.vmem [#allocation8], %s1583_s4  ;;  %s292_s7 = sand.u32 1, %s2109_s13  }
  0x9e   : > { %725 = vmatpush1.bf16.msra.mxu0 %v1874_v3  ;;  %1709 = vmatpush1.bf16.msra.mxu1 %v1874_v3  ;;  %v499_v15 = vpack.c.bf16 %v437_v14, %v435_v13  ;;  %v467_v16 = vld [vmem:[%s2471_s20 + $0x108] sm:$0xff]  ;;  %v469_v17 = vld [vmem:[%s2471_s20 + $0x118] sm:$0xff]  ;;  %v436_v39 = vld [vmem:[%s2471_s20 + $0x10] sm:$0xff]  ;;  %s1584_s9 = sshll.u32 %s292_s7, 8  ;;  %s2834_s10 = sld [smem:[#allocation17_spill]] }
  0x9f   : > { %726 = vmatprep.subr.bf16.mxu0 %v1875_v4  ;;  %1694 = vmatprep.subr.bf16.mxu1 %v1875_v4  ;;  %v515_v19 = vpack.c.bf16 %v469_v17, %v467_v16  ;;  %v1890_v20 = vld [vmem:[%s2481_s18 + $0x74] ss:$8 sps:$4 sm:$0xff]   ;;  %v1892_v21 = vld [vmem:[%s2481_s18 + $0x70] ss:$8 sps:$4 sm:$0xff]   ;;  %v1893_v22 = vld [vmem:[%s2481_s18 + $0x84] ss:$8 sps:$4 sm:$0xff]   ;;  %v498_v46 = vpack.c.bf16 %v436_v39, %v434_v38 }
  0xa0   : > { %754 = vmatprep.mubr.bf16.mxu0 %v499_v15  ;;  %v1895_v23 = vld [vmem:[%s2481_s18 + $0x80] ss:$8 sps:$4 sm:$0xff]   ;;  %v1896_v24 = vld [vmem:[%s2481_s18 + $0x94] ss:$8 sps:$4 sm:$0xff]   ;;  %v1898_v25 = vld [vmem:[%s2481_s18 + $0x90] ss:$8 sps:$4 sm:$0xff]  }
  0xa1   : > { %834 = vmatprep.mubr.bf16.mxu1 %v515_v19  ;;  %v1899_v26 = vld [vmem:[%s2481_s18 + $0xa4] ss:$8 sps:$4 sm:$0xff]   ;;  %v1901_v27 = vld [vmem:[%s2481_s18 + $0xa0] ss:$8 sps:$4 sm:$0xff]   ;;  %v1902_v28 = vld [vmem:[%s2481_s18 + $0xb4] ss:$8 sps:$4 sm:$0xff]  }
  0xa2   : > { %727 = vmatpush1.bf16.msra.mxu0 %v1877_v5  ;;  %1710 = vmatpush1.bf16.msra.mxu1 %v1877_v5  ;;  %v1904_v29 = vld [vmem:[%s2481_s18 + $0xb0] ss:$8 sps:$4 sm:$0xff]   ;;  %v1905_v30 = vld [vmem:[%s2481_s18 + $0xc4] ss:$8 sps:$4 sm:$0xff]   ;;  %v1907_v31 = vld [vmem:[%s2481_s18 + $0xc0] ss:$8 sps:$4 sm:$0xff]  }
  0xa3   : > { %728 = vmatprep.subr.bf16.mxu0 %v1878_v6  ;;  %1695 = vmatprep.subr.bf16.mxu1 %v1878_v6  ;;  %v1908_v32 = vld [vmem:[%s2481_s18 + $0xd4] ss:$8 sps:$4 sm:$0xff]   ;;  %v1910_v33 = vld [vmem:[%s2481_s18 + $0xd0] ss:$8 sps:$4 sm:$0xff]   ;;  %v1911_v34 = vld [vmem:[%s2481_s18 + $0xe4] ss:$8 sps:$4 sm:$0xff]  }
  0xa4   : > { %v1913_v35 = vld [vmem:[%s2481_s18 + $0xe0] ss:$8 sps:$4 sm:$0xff]   ;;  %v1914_v36 = vld [vmem:[%s2481_s18 + $0xf4] ss:$8 sps:$4 sm:$0xff]   ;;  %v1916_v37 = vld [vmem:[%s2481_s18 + $0xf0] ss:$8 sps:$4 sm:$0xff]  }
  0xa5   : > { %v466_v40 = vld [vmem:[%s2471_s20 + $0x100] sm:$0xff]  ;;  %v468_v41 = vld [vmem:[%s2471_s20 + $0x110] sm:$0xff]  ;;  %v439_v42 = vld [vmem:[%s2471_s20 + $0x28] sm:$0xff]  ;;  %s2600_s5 = scalar_lea.vmem [#allocation9], %s1584_s9  ;;  %s2835_s24 = sld [smem:[#allocation16_spill]] }
  0xa6   : > { %729 = vmatpush1.bf16.msra.mxu0 %v1880_v7  ;;  %1711 = vmatpush1.bf16.msra.mxu1 %v1880_v7  ;;  %v441_v43 = vld [vmem:[%s2471_s20 + $0x38] sm:$0xff]  ;;  %v471_v44 = vld [vmem:[%s2471_s20 + $0x128] sm:$0xff]  ;;  %v514_v47 = vpack.c.bf16 %v468_v41, %v466_v40  ;;  %v438_v50 = vld [vmem:[%s2471_s20 + $0x20] sm:$0xff]  ;;  %s1724_s17 = smul.u32 192, %s2834_s10  ;;  %s1427_s21 = sshll.u32 %s2600_s5, 4  ;;  %s2694_s21 = int_to_ptr.vmem [resolvable:$true] %s1427_s21 }
  0xa7   : > { %730 = vmatprep.subr.bf16.mxu0 %v1881_v8  ;;  %1696 = vmatprep.subr.bf16.mxu1 %v1881_v8  ;;  %v473_v45 = vld [vmem:[%s2471_s20 + $0x138] sm:$0xff]  ;;  %v501_v48 = vpack.c.bf16 %v441_v43, %v439_v42  ;;  %v440_v51 = vld [vmem:[%s2471_s20 + $0x30] sm:$0xff]  ;;  %v470_v52 = vld [vmem:[%s2471_s20 + $0x120] sm:$0xff]  ;;  %s2836_s8 = sld [smem:[#allocation27_spill]]  ;;  %s2702_s22 = scalar_lea.sflag [#allocation5], %s292_s7 }
  0xa8   : > { %v517_v49 = vpack.c.bf16 %v473_v45, %v471_v44  ;;  %v472_v53 = vld [vmem:[%s2471_s20 + $0x130] sm:$0xff]  ;;  %v443_v54 = vld [vmem:[%s2471_s20 + $0x48] sm:$0xff]  ;;  %v445_v55 = vld [vmem:[%s2471_s20 + $0x58] sm:$0xff]  ;;  %v500_v58 = vpack.c.bf16 %v440_v51, %v438_v50  ;;  %p2837_p11 = scmp.ne.s32.totalorder %s2822_s28, 0  ;;  %s2167_s30 = smov [#allocation9]  }
  0xa9   : > { %v475_v56 = vld [vmem:[%s2471_s20 + $0x148] sm:$0xff]  ;;  %v477_v57 = vld [vmem:[%s2471_s20 + $0x158] sm:$0xff]  ;;  %v516_v59 = vpack.c.bf16 %v472_v53, %v470_v52  ;;  %v503_v60 = vpack.c.bf16 %v445_v55, %v443_v54  ;;  %v442_v62 = vld [vmem:[%s2471_s20 + $0x40] sm:$0xff]  ;;  %s2011_s11 = sshll.u32 %s2167_s30, 4  ;;  %s2012_s11 = int_to_ptr.vmem [resolvable:$false] %s2011_s11 }
  0xaa   : > { %731 = vmatpush1.bf16.msra.mxu0 %v1883_v9  ;;  %1712 = vmatpush1.bf16.msra.mxu1 %v1883_v9  ;;  %v519_v61 = vpack.c.bf16 %v477_v57, %v475_v56  ;;  %v444_v63 = vld [vmem:[%s2471_s20 + $0x50] sm:$0xff]  ;;  %v474_v0 = vld [vmem:[%s2471_s20 + $0x140] sm:$0xff]  ;;  %v447_v2 = vld [vmem:[%s2471_s20 + $0x68] sm:$0xff]  ;;  %s2013_s29 = scalar_lea.vmem %s2012_s11, 8192  ;;  %p2014_p3 = scmp.lt.s32.totalorder %s2694_s21, %s2012_s11 }
  0xab   : > { %732 = vmatprep.subr.bf16.mxu0 %v1884_v10  ;;  %1697 = vmatprep.subr.bf16.mxu1 %v1884_v10  ;;  %v476_v1 = vld [vmem:[%s2471_s20 + $0x150] sm:$0xff]  ;;  %v449_v3 = vld [vmem:[%s2471_s20 + $0x78] sm:$0xff]  ;;  %v479_v4 = vld [vmem:[%s2471_s20 + $0x168] sm:$0xff]  ;;  %v502_v6 = vpack.c.bf16 %v444_v63, %v442_v62  ;;  %s1651_s6 = sshll.u32 %s2835_s24, 1 }
  0xac   : > { %v481_v5 = vld [vmem:[%s2471_s20 + $0x178] sm:$0xff]  ;;  %v518_v7 = vpack.c.bf16 %v476_v1, %v474_v0  ;;  %v505_v8 = vpack.c.bf16 %v449_v3, %v447_v2  ;;  %v446_v10 = vld [vmem:[%s2471_s20 + $0x60] sm:$0xff]  ;;  %v480_v13 = vld [vmem:[%s2471_s20 + $0x170] sm:$0xff]  ;;  %v1112_v0 = vlaneseq  ;;  %s1424_s3 = sadd.s32 %s1724_s17, %s1651_s6 }
  0xad   : > { %v521_v9 = vpack.c.bf16 %v481_v5, %v479_v4  ;;  %v451_v14 = vld [vmem:[%s2471_s20 + $0x88] sm:$0xff]  ;;  %v453_v15 = vld [vmem:[%s2471_s20 + $0x98] sm:$0xff]  ;;  %v1110_v3 = vld [vmem:[%s262_s27] sm:$0x3]  ;;  %s1653_s0 = sshll.u32 %s1424_s3, 6 }
  0xae   : > { %733 = vmatpush1.bf16.msra.mxu0 %v1886_v11  ;;  %1713 = vmatpush1.bf16.msra.mxu1 %v1886_v11  ;;  %v448_v11 = vld [vmem:[%s2471_s20 + $0x70] sm:$0xff]  ;;  %v483_v16 = vld [vmem:[%s2471_s20 + $0x188] sm:$0xff]  ;;  %v485_v17 = vld [vmem:[%s2471_s20 + $0x198] sm:$0xff]  ;;  %v1113_v1 = vshrl.u32 %v1112_v0, 7  ;;  %s2692_s1 = scalar_lea.hbm %s2836_s8, %s1653_s0 }
  0xaf   : > { %734 = vmatprep.subr.bf16.mxu0 %v1887_v12  ;;  %1698 = vmatprep.subr.bf16.mxu1 %v1887_v12  ;;  %v478_v12 = vld [vmem:[%s2471_s20 + $0x160] sm:$0xff]  ;;  %v459_v38 = vld [vmem:[%s2471_s20 + $0xc8] sm:$0xff]  ;;  %v461_v39 = vld [vmem:[%s2471_s20 + $0xd8] sm:$0xff] }
  0xb0   : > { %v520_v19 = vpack.c.bf16 %v480_v13, %v478_v12  ;;  %v491_v40 = vld [vmem:[%s2471_s20 + $0x1c8] sm:$0xff]  ;;  %v493_v41 = vld [vmem:[%s2471_s20 + $0x1d8] sm:$0xff]  ;;  %v511_v44 = vpack.c.bf16 %v461_v39, %v459_v38  ;;  %v1114_v2 = vsub.s32 0, %v1113_v1  ;;  %v1118_v4 = vsub.s32 1, %v1113_v1 }
  0xb1   : > { %v527_v45 = vpack.c.bf16 %v493_v41, %v491_v40  ;;  %v463_v50 = vld [vmem:[%s2471_s20 + $0xe8] sm:$0xff]  ;;  %v465_v51 = vld [vmem:[%s2471_s20 + $0xf8] sm:$0xff] }
  0xb2   : > { %735 = vmatpush1.bf16.msra.mxu0 %v1889_v18  ;;  %1714 = vmatpush1.bf16.msra.mxu1 %v1889_v18  ;;  %v504_v18 = vpack.c.bf16 %v448_v11, %v446_v10  ;;  %v495_v52 = vld [vmem:[%s2471_s20 + $0x1e8] sm:$0xff]  ;;  %v497_v53 = vld [vmem:[%s2471_s20 + $0x1f8] sm:$0xff]  ;;  %v513_v56 = vpack.c.bf16 %v465_v51, %v463_v50  ;;  %v2585_v5 = vrot.slane %v1110_v3, %v1114_v2 }
  0xb3   : > { %736 = vmatprep.subr.bf16.mxu0 %v1890_v20  ;;  %1699 = vmatprep.subr.bf16.mxu1 %v1890_v20  ;;  %v507_v20 = vpack.c.bf16 %v453_v15, %v451_v14  ;;  %v529_v57 = vpack.c.bf16 %v497_v53, %v495_v52 }
  0xb6   : > { %737 = vmatpush1.bf16.msra.mxu0 %v1892_v21  ;;  %1715 = vmatpush1.bf16.msra.mxu1 %v1892_v21  ;;  %v523_v21 = vpack.c.bf16 %v485_v17, %v483_v16 }
  0xb7   : > { %738 = vmatprep.subr.bf16.mxu0 %v1893_v22  ;;  %1700 = vmatprep.subr.bf16.mxu1 %v1893_v22  ;;  %v450_v22 = vld [vmem:[%s2471_s20 + $0x80] sm:$0xff] }
  0xba   : > { %739 = vmatpush1.bf16.msra.mxu0 %v1895_v23  ;;  %1716 = vmatpush1.bf16.msra.mxu1 %v1895_v23  ;;  %v452_v23 = vld [vmem:[%s2471_s20 + $0x90] sm:$0xff] }
  0xbb   : > { %740 = vmatprep.subr.bf16.mxu0 %v1896_v24  ;;  %1701 = vmatprep.subr.bf16.mxu1 %v1896_v24  ;;  %v482_v24 = vld [vmem:[%s2471_s20 + $0x180] sm:$0xff] }
  0xbe   : > { %741 = vmatpush1.bf16.msra.mxu0 %v1898_v25  ;;  %1717 = vmatpush1.bf16.msra.mxu1 %v1898_v25  ;;  %v484_v25 = vld [vmem:[%s2471_s20 + $0x190] sm:$0xff] }
  0xbf   : > { %742 = vmatprep.subr.bf16.mxu0 %v1899_v26  ;;  %1702 = vmatprep.subr.bf16.mxu1 %v1899_v26  ;;  %v455_v26 = vld [vmem:[%s2471_s20 + $0xa8] sm:$0xff] }
  0xc2   : > { %743 = vmatpush1.bf16.msra.mxu0 %v1901_v27  ;;  %1718 = vmatpush1.bf16.msra.mxu1 %v1901_v27  ;;  %v457_v27 = vld [vmem:[%s2471_s20 + $0xb8] sm:$0xff] }
  0xc3   : > { %744 = vmatprep.subr.bf16.mxu0 %v1902_v28  ;;  %1703 = vmatprep.subr.bf16.mxu1 %v1902_v28  ;;  %v487_v28 = vld [vmem:[%s2471_s20 + $0x1a8] sm:$0xff] }
  0xc6   : > { %745 = vmatpush1.bf16.msra.mxu0 %v1904_v29  ;;  %1719 = vmatpush1.bf16.msra.mxu1 %v1904_v29  ;;  %v489_v29 = vld [vmem:[%s2471_s20 + $0x1b8] sm:$0xff] }
  0xc7   : > { %746 = vmatprep.subr.bf16.mxu0 %v1905_v30  ;;  %1704 = vmatprep.subr.bf16.mxu1 %v1905_v30  ;;  %v506_v30 = vpack.c.bf16 %v452_v23, %v450_v22 }
  0xca   : > { %747 = vmatpush1.bf16.msra.mxu0 %v1907_v31  ;;  %1720 = vmatpush1.bf16.msra.mxu1 %v1907_v31  ;;  %v522_v31 = vpack.c.bf16 %v484_v25, %v482_v24 }
  0xcb   : > { %748 = vmatprep.subr.bf16.mxu0 %v1908_v32  ;;  %1705 = vmatprep.subr.bf16.mxu1 %v1908_v32  ;;  %v509_v32 = vpack.c.bf16 %v457_v27, %v455_v26 }
  0xce   : > { %749 = vmatpush1.bf16.msra.mxu0 %v1910_v33  ;;  %1721 = vmatpush1.bf16.msra.mxu1 %v1910_v33  ;;  %v525_v33 = vpack.c.bf16 %v489_v29, %v487_v28 }
  0xcf   : > { %750 = vmatprep.subr.bf16.mxu0 %v1911_v34  ;;  %1706 = vmatprep.subr.bf16.mxu1 %v1911_v34  ;;  %v454_v34 = vld [vmem:[%s2471_s20 + $0xa0] sm:$0xff] }
  0xd2   : > { %751 = vmatpush1.bf16.msra.mxu0 %v1913_v35  ;;  %1722 = vmatpush1.bf16.msra.mxu1 %v1913_v35  ;;  %v456_v35 = vld [vmem:[%s2471_s20 + $0xb0] sm:$0xff] }
  0xd3   : > { %752 = vmatprep.subr.bf16.mxu0 %v1914_v36  ;;  %1707 = vmatprep.subr.bf16.mxu1 %v1914_v36  ;;  %v486_v36 = vld [vmem:[%s2471_s20 + $0x1a0] sm:$0xff]  ;;  %v508_v42 = vpack.c.bf16 %v456_v35, %v454_v34 }
  0xd6   : > { %753 = vmatpush1.bf16.msra.mxu0 %v1916_v37  ;;  %1723 = vmatpush1.bf16.msra.mxu1 %v1916_v37  ;;  %v488_v37 = vld [vmem:[%s2471_s20 + $0x1b0] sm:$0xff] }
  0xd7   : > { %v524_v43 = vpack.c.bf16 %v488_v37, %v486_v36 }
  0xd9   : > { %755 = vmatmul.mubr.bf16.vlgmr.msra.gmra.mrb[0].mxu0 %v498_v46  ;;  %835 = vmatmul.mubr.bf16.vlgmr.msra.gmra.mrb[0].mxu1 %v514_v47  ;;  %v458_v46 = vld [vmem:[%s2471_s20 + $0xc0] sm:$0xff]  ;;  %v460_v47 = vld [vmem:[%s2471_s20 + $0xd0] sm:$0xff] }
  0xda   : > { %764 = vmatprep.mubr.bf16.mxu0 %v501_v48  ;;  %844 = vmatprep.mubr.bf16.mxu1 %v517_v49  ;;  %v490_v48 = vld [vmem:[%s2471_s20 + $0x1c0] sm:$0xff]  ;;  %v492_v49 = vld [vmem:[%s2471_s20 + $0x1d0] sm:$0xff]  ;;  %v510_v54 = vpack.c.bf16 %v460_v47, %v458_v46 }
  0xdb   : > { %v526_v55 = vpack.c.bf16 %v492_v49, %v490_v48 }
  0xe1   : > { %765 = vmatmul.mubr.bf16.gmra.mrb[4].mxu0 %v500_v58  ;;  %845 = vmatmul.mubr.bf16.gmra.mrb[4].mxu1 %v516_v59  ;;  %v462_v58 = vld [vmem:[%s2471_s20 + $0xe0] sm:$0xff]  ;;  %v464_v59 = vld [vmem:[%s2471_s20 + $0xf0] sm:$0xff] }
  0xe2   : > { %774 = vmatprep.mubr.bf16.mxu0 %v503_v60  ;;  %854 = vmatprep.mubr.bf16.mxu1 %v519_v61  ;;  %v494_v60 = vld [vmem:[%s2471_s20 + $0x1e0] sm:$0xff]  ;;  %v496_v61 = vld [vmem:[%s2471_s20 + $0x1f0] sm:$0xff]  ;;  %v512_v62 = vpack.c.bf16 %v464_v59, %v462_v58  ;;  %s2007_s20 = scalar_lea.vmem %s2694_s21, 4096 }
  0xe3   : > { %v528_v63 = vpack.c.bf16 %v496_v61, %v494_v60  ;;  %p2008_p2 = scmp.ne.s32.totalorder %s2694_s21, %s2007_s20  ;;  %p2015_p9 = scmp.lt.s32.totalorder %s2013_s29, %s2007_s20 }
  0xe5   : > { %p2009_p10 = pnand %p2008_p2, %p2837_p11  ;;  %p2016_p4 = por %p2015_p9, %p2014_p3 }
  0xe7   : > { %p2010_p12 = pneg %p2009_p10 }
  0xe9   : > { %775 = vmatmul.mubr.bf16.gmra.mrb[8].mxu0 %v502_v6  ;;  %855 = vmatmul.mubr.bf16.gmra.mrb[8].mxu1 %v518_v7  ;;  %v2588_v6 = vrot.slane %v1110_v3, %v1118_v4  ;;  %p2017_p1 = pnand %p2016_p4, %p2010_p12 }
  0xea   : > { %784 = vmatprep.mubr.bf16.mxu0 %v505_v8  ;;  %864 = vmatprep.mubr.bf16.mxu1 %v521_v9 }
  0xf1   : > { %785 = vmatmul.mubr.bf16.gmra.mrb[12].mxu0 %v504_v18  ;;  %865 = vmatmul.mubr.bf16.gmra.mrb[12].mxu1 %v520_v19 }
  0xf2   : > { %794 = vmatprep.mubr.bf16.mxu0 %v507_v20  ;;  %874 = vmatprep.mubr.bf16.mxu1 %v523_v21 }
  0xf9   : > { %795 = vmatmul.mubr.bf16.gmra.mrb[16].mxu0 %v506_v30  ;;  %875 = vmatmul.mubr.bf16.gmra.mrb[16].mxu1 %v522_v31 }
  0xfa   : > { %804 = vmatprep.mubr.bf16.mxu0 %v509_v32  ;;  %884 = vmatprep.mubr.bf16.mxu1 %v525_v33 }
 0x101   : > { %805 = vmatmul.mubr.bf16.gmra.mrb[20].mxu0 %v508_v42  ;;  %885 = vmatmul.mubr.bf16.gmra.mrb[20].mxu1 %v524_v43 }
 0x102   : > { %814 = vmatprep.mubr.bf16.mxu0 %v511_v44  ;;  %894 = vmatprep.mubr.bf16.mxu1 %v527_v45 }
 0x109   : > { %815 = vmatmul.mubr.bf16.gmra.mrb[24].mxu0 %v510_v54  ;;  %895 = vmatmul.mubr.bf16.gmra.mrb[24].mxu1 %v526_v55 }
 0x10a   : > { %824 = vmatprep.mubr.bf16.mxu0 %v513_v56  ;;  %904 = vmatprep.mubr.bf16.mxu1 %v529_v57 }
 0x111   : > { %825 = vmatmul.mubr.bf16.gmra.mrb[28].mxu0 %v512_v62  ;;  %905 = vmatmul.mubr.bf16.gmra.mrb[28].mxu1 %v528_v63 }
 0x1ac   : > { %v756_v7 = vpop.f32.mrb[0].mxu0  ;;  %v836_v8 = vpop.f32.mrb[0].mxu1 }
 0x1ad   : > { %v1122_v9 = vadd.f32 %v2585_v5, %v756_v7  ;;  %v1154_v10 = vadd.f32 %v2585_v5, %v836_v8  ;;  %v758_v11 = vpop.f32.mrb[1].mxu0  ;;  %v838_v12 = vpop.f32.mrb[1].mxu1 }
 0x1ae   : > { %v1123_v13 = vadd.f32 %v2588_v6, %v758_v11  ;;  %v1155_v14 = vadd.f32 %v2588_v6, %v838_v12  ;;  %v760_v15 = vpop.f32.mrb[2].mxu0  ;;  %v840_v16 = vpop.f32.mrb[2].mxu1 }
 0x1af   : > { %v1124_v17 = vadd.f32 %v2585_v5, %v760_v15  ;;  %v1156_v18 = vadd.f32 %v2585_v5, %v840_v16  ;;  %v762_v19 = vpop.f32.mrb[3].mxu0  ;;  %v842_v20 = vpop.f32.mrb[3].mxu1 }
 0x1b0   : > { %v1660_v21 = vpack.c.bf16 %v1123_v13, %v1122_v9  ;;  %v1676_v22 = vpack.c.bf16 %v1155_v14, %v1154_v10  ;;  %v1125_v23 = vadd.f32 %v2588_v6, %v762_v19  ;;  %v1157_v24 = vadd.f32 %v2588_v6, %v842_v20 }
 0x1b2   : > { %1378 = vst [vmem:[%s2600_s5] sm:$0xff] %v1660_v21  ;;  %1394 = vst [vmem:[%s2600_s5 + $0x80] sm:$0xff] %v1676_v22  ;;  %v1661_v25 = vpack.c.bf16 %v1125_v23, %v1124_v17  ;;  %v1677_v26 = vpack.c.bf16 %v1157_v24, %v1156_v18 }
 0x1b4   : > { %1379 = vst [vmem:[%s2600_s5 + $0x8] sm:$0xff] %v1661_v25  ;;  %1395 = vst [vmem:[%s2600_s5 + $0x88] sm:$0xff] %v1677_v26  ;;  %v766_v27 = vpop.f32.mrb[4].mxu0  ;;  %v846_v28 = vpop.f32.mrb[4].mxu1 }
 0x1b5   : > { %v1126_v29 = vadd.f32 %v2585_v5, %v766_v27  ;;  %v1158_v30 = vadd.f32 %v2585_v5, %v846_v28  ;;  %v768_v31 = vpop.f32.mrb[5].mxu0  ;;  %v848_v32 = vpop.f32.mrb[5].mxu1 }
 0x1b6   : > { %v1127_v33 = vadd.f32 %v2588_v6, %v768_v31  ;;  %v1159_v34 = vadd.f32 %v2588_v6, %v848_v32  ;;  %v770_v35 = vpop.f32.mrb[6].mxu0  ;;  %v850_v36 = vpop.f32.mrb[6].mxu1 }
 0x1b7   : > { %v1128_v37 = vadd.f32 %v2585_v5, %v770_v35  ;;  %v1160_v38 = vadd.f32 %v2585_v5, %v850_v36  ;;  %v772_v39 = vpop.f32.mrb[7].mxu0  ;;  %v852_v40 = vpop.f32.mrb[7].mxu1 }
 0x1b8   : > { %v1662_v41 = vpack.c.bf16 %v1127_v33, %v1126_v29  ;;  %v1678_v42 = vpack.c.bf16 %v1159_v34, %v1158_v30  ;;  %v1129_v43 = vadd.f32 %v2588_v6, %v772_v39  ;;  %v1161_v44 = vadd.f32 %v2588_v6, %v852_v40 }
 0x1ba   : > { %1380 = vst [vmem:[%s2600_s5 + $0x10] sm:$0xff] %v1662_v41  ;;  %1396 = vst [vmem:[%s2600_s5 + $0x90] sm:$0xff] %v1678_v42  ;;  %v1663_v45 = vpack.c.bf16 %v1129_v43, %v1128_v37  ;;  %v1679_v46 = vpack.c.bf16 %v1161_v44, %v1160_v38 }
 0x1bc   : > { %1381 = vst [vmem:[%s2600_s5 + $0x18] sm:$0xff] %v1663_v45  ;;  %1397 = vst [vmem:[%s2600_s5 + $0x98] sm:$0xff] %v1679_v46  ;;  %v776_v47 = vpop.f32.mrb[8].mxu0  ;;  %v856_v48 = vpop.f32.mrb[8].mxu1 }
 0x1bd   : > { %v1130_v49 = vadd.f32 %v2585_v5, %v776_v47  ;;  %v1162_v50 = vadd.f32 %v2585_v5, %v856_v48  ;;  %v778_v51 = vpop.f32.mrb[9].mxu0  ;;  %v858_v52 = vpop.f32.mrb[9].mxu1 }
 0x1be   : > { %v1131_v53 = vadd.f32 %v2588_v6, %v778_v51  ;;  %v1163_v54 = vadd.f32 %v2588_v6, %v858_v52  ;;  %v780_v55 = vpop.f32.mrb[10].mxu0  ;;  %v860_v56 = vpop.f32.mrb[10].mxu1 }
 0x1bf   : > { %v1132_v57 = vadd.f32 %v2585_v5, %v780_v55  ;;  %v1164_v58 = vadd.f32 %v2585_v5, %v860_v56  ;;  %v782_v59 = vpop.f32.mrb[11].mxu0  ;;  %v862_v60 = vpop.f32.mrb[11].mxu1 }
 0x1c0   : > { %v1664_v61 = vpack.c.bf16 %v1131_v53, %v1130_v49  ;;  %v1680_v62 = vpack.c.bf16 %v1163_v54, %v1162_v50  ;;  %v1133_v63 = vadd.f32 %v2588_v6, %v782_v59  ;;  %v1165_v0 = vadd.f32 %v2588_v6, %v862_v60 }
 0x1c2   : > { %1382 = vst [vmem:[%s2600_s5 + $0x20] sm:$0xff] %v1664_v61  ;;  %1398 = vst [vmem:[%s2600_s5 + $0xa0] sm:$0xff] %v1680_v62  ;;  %v1665_v1 = vpack.c.bf16 %v1133_v63, %v1132_v57  ;;  %v1681_v2 = vpack.c.bf16 %v1165_v0, %v1164_v58 }
 0x1c4   : > { %1383 = vst [vmem:[%s2600_s5 + $0x28] sm:$0xff] %v1665_v1  ;;  %1399 = vst [vmem:[%s2600_s5 + $0xa8] sm:$0xff] %v1681_v2  ;;  %v786_v3 = vpop.f32.mrb[12].mxu0  ;;  %v866_v4 = vpop.f32.mrb[12].mxu1 }
 0x1c5   : > { %v1134_v7 = vadd.f32 %v2585_v5, %v786_v3  ;;  %v1166_v8 = vadd.f32 %v2585_v5, %v866_v4  ;;  %v788_v9 = vpop.f32.mrb[13].mxu0  ;;  %v868_v10 = vpop.f32.mrb[13].mxu1 }
 0x1c6   : > { %v1135_v11 = vadd.f32 %v2588_v6, %v788_v9  ;;  %v1167_v12 = vadd.f32 %v2588_v6, %v868_v10  ;;  %v790_v13 = vpop.f32.mrb[14].mxu0  ;;  %v870_v14 = vpop.f32.mrb[14].mxu1 }
 0x1c7   : > { %v1136_v15 = vadd.f32 %v2585_v5, %v790_v13  ;;  %v1168_v16 = vadd.f32 %v2585_v5, %v870_v14  ;;  %v792_v17 = vpop.f32.mrb[15].mxu0  ;;  %v872_v18 = vpop.f32.mrb[15].mxu1 }
 0x1c8   : > { %v1666_v19 = vpack.c.bf16 %v1135_v11, %v1134_v7  ;;  %v1682_v20 = vpack.c.bf16 %v1167_v12, %v1166_v8  ;;  %v1137_v21 = vadd.f32 %v2588_v6, %v792_v17  ;;  %v1169_v22 = vadd.f32 %v2588_v6, %v872_v18 }
 0x1ca   : > { %1384 = vst [vmem:[%s2600_s5 + $0x30] sm:$0xff] %v1666_v19  ;;  %1400 = vst [vmem:[%s2600_s5 + $0xb0] sm:$0xff] %v1682_v20  ;;  %v1667_v23 = vpack.c.bf16 %v1137_v21, %v1136_v15  ;;  %v1683_v24 = vpack.c.bf16 %v1169_v22, %v1168_v16 }
 0x1cc   : > { %1385 = vst [vmem:[%s2600_s5 + $0x38] sm:$0xff] %v1667_v23  ;;  %1401 = vst [vmem:[%s2600_s5 + $0xb8] sm:$0xff] %v1683_v24  ;;  %v796_v25 = vpop.f32.mrb[16].mxu0  ;;  %v876_v26 = vpop.f32.mrb[16].mxu1 }
 0x1cd   : > { %v1138_v27 = vadd.f32 %v2585_v5, %v796_v25  ;;  %v1170_v28 = vadd.f32 %v2585_v5, %v876_v26  ;;  %v798_v29 = vpop.f32.mrb[17].mxu0  ;;  %v878_v30 = vpop.f32.mrb[17].mxu1 }
 0x1ce   : > { %v1139_v31 = vadd.f32 %v2588_v6, %v798_v29  ;;  %v1171_v32 = vadd.f32 %v2588_v6, %v878_v30  ;;  %v800_v33 = vpop.f32.mrb[18].mxu0  ;;  %v880_v34 = vpop.f32.mrb[18].mxu1 }
 0x1cf   : > { %v1140_v35 = vadd.f32 %v2585_v5, %v800_v33  ;;  %v1172_v36 = vadd.f32 %v2585_v5, %v880_v34  ;;  %v802_v37 = vpop.f32.mrb[19].mxu0  ;;  %v882_v38 = vpop.f32.mrb[19].mxu1 }
 0x1d0   : > { %v1668_v39 = vpack.c.bf16 %v1139_v31, %v1138_v27  ;;  %v1684_v40 = vpack.c.bf16 %v1171_v32, %v1170_v28  ;;  %v1141_v41 = vadd.f32 %v2588_v6, %v802_v37  ;;  %v1173_v42 = vadd.f32 %v2588_v6, %v882_v38 }
 0x1d2   : > { %1386 = vst [vmem:[%s2600_s5 + $0x40] sm:$0xff] %v1668_v39  ;;  %1402 = vst [vmem:[%s2600_s5 + $0xc0] sm:$0xff] %v1684_v40  ;;  %v1669_v43 = vpack.c.bf16 %v1141_v41, %v1140_v35  ;;  %v1685_v44 = vpack.c.bf16 %v1173_v42, %v1172_v36 }
 0x1d4   : > { %1387 = vst [vmem:[%s2600_s5 + $0x48] sm:$0xff] %v1669_v43  ;;  %1403 = vst [vmem:[%s2600_s5 + $0xc8] sm:$0xff] %v1685_v44  ;;  %v806_v45 = vpop.f32.mrb[20].mxu0  ;;  %v886_v46 = vpop.f32.mrb[20].mxu1 }
 0x1d5   : > { %v1142_v47 = vadd.f32 %v2585_v5, %v806_v45  ;;  %v1174_v48 = vadd.f32 %v2585_v5, %v886_v46  ;;  %v808_v49 = vpop.f32.mrb[21].mxu0  ;;  %v888_v50 = vpop.f32.mrb[21].mxu1 }
 0x1d6   : > { %v1143_v51 = vadd.f32 %v2588_v6, %v808_v49  ;;  %v1175_v52 = vadd.f32 %v2588_v6, %v888_v50  ;;  %v810_v53 = vpop.f32.mrb[22].mxu0  ;;  %v890_v54 = vpop.f32.mrb[22].mxu1 }
 0x1d7   : > { %v1144_v55 = vadd.f32 %v2585_v5, %v810_v53  ;;  %v1176_v56 = vadd.f32 %v2585_v5, %v890_v54  ;;  %v812_v57 = vpop.f32.mrb[23].mxu0  ;;  %v892_v58 = vpop.f32.mrb[23].mxu1 }
 0x1d8   : > { %v1670_v59 = vpack.c.bf16 %v1143_v51, %v1142_v47  ;;  %v1686_v60 = vpack.c.bf16 %v1175_v52, %v1174_v48  ;;  %v1145_v61 = vadd.f32 %v2588_v6, %v812_v57  ;;  %v1177_v62 = vadd.f32 %v2588_v6, %v892_v58 }
 0x1da   : > { %1388 = vst [vmem:[%s2600_s5 + $0x50] sm:$0xff] %v1670_v59  ;;  %1404 = vst [vmem:[%s2600_s5 + $0xd0] sm:$0xff] %v1686_v60  ;;  %v1671_v63 = vpack.c.bf16 %v1145_v61, %v1144_v55  ;;  %v1687_v0 = vpack.c.bf16 %v1177_v62, %v1176_v56 }
 0x1dc   : > { %1389 = vst [vmem:[%s2600_s5 + $0x58] sm:$0xff] %v1671_v63  ;;  %1405 = vst [vmem:[%s2600_s5 + $0xd8] sm:$0xff] %v1687_v0  ;;  %v816_v1 = vpop.f32.mrb[24].mxu0  ;;  %v896_v2 = vpop.f32.mrb[24].mxu1 }
 0x1dd   : > { %v1146_v3 = vadd.f32 %v2585_v5, %v816_v1  ;;  %v1178_v4 = vadd.f32 %v2585_v5, %v896_v2  ;;  %v818_v7 = vpop.f32.mrb[25].mxu0  ;;  %v898_v8 = vpop.f32.mrb[25].mxu1 }
 0x1de   : > { %v1147_v9 = vadd.f32 %v2588_v6, %v818_v7  ;;  %v1179_v10 = vadd.f32 %v2588_v6, %v898_v8  ;;  %v820_v11 = vpop.f32.mrb[26].mxu0  ;;  %v900_v12 = vpop.f32.mrb[26].mxu1 }
 0x1df   : > { %v1148_v13 = vadd.f32 %v2585_v5, %v820_v11  ;;  %v1180_v14 = vadd.f32 %v2585_v5, %v900_v12  ;;  %v822_v15 = vpop.f32.mrb[27].mxu0  ;;  %v902_v16 = vpop.f32.mrb[27].mxu1 }
 0x1e0   : > { %v1672_v17 = vpack.c.bf16 %v1147_v9, %v1146_v3  ;;  %v1688_v18 = vpack.c.bf16 %v1179_v10, %v1178_v4  ;;  %v1149_v19 = vadd.f32 %v2588_v6, %v822_v15  ;;  %v1181_v20 = vadd.f32 %v2588_v6, %v902_v16 }
 0x1e2   : > { %1390 = vst [vmem:[%s2600_s5 + $0x60] sm:$0xff] %v1672_v17  ;;  %1406 = vst [vmem:[%s2600_s5 + $0xe0] sm:$0xff] %v1688_v18  ;;  %v1673_v21 = vpack.c.bf16 %v1149_v19, %v1148_v13  ;;  %v1689_v22 = vpack.c.bf16 %v1181_v20, %v1180_v14 }
 0x1e4   : > { %1391 = vst [vmem:[%s2600_s5 + $0x68] sm:$0xff] %v1673_v21  ;;  %1407 = vst [vmem:[%s2600_s5 + $0xe8] sm:$0xff] %v1689_v22  ;;  %v826_v23 = vpop.f32.mrb[28].mxu0  ;;  %v906_v24 = vpop.f32.mrb[28].mxu1 }
 0x1e5   : > { %v1150_v25 = vadd.f32 %v2585_v5, %v826_v23  ;;  %v1182_v26 = vadd.f32 %v2585_v5, %v906_v24  ;;  %v828_v27 = vpop.f32.mrb[29].mxu0  ;;  %v908_v28 = vpop.f32.mrb[29].mxu1 }
 0x1e6   : > { %v1151_v29 = vadd.f32 %v2588_v6, %v828_v27  ;;  %v1183_v30 = vadd.f32 %v2588_v6, %v908_v28  ;;  %v830_v31 = vpop.f32.mrb[30].mxu0  ;;  %v910_v32 = vpop.f32.mrb[30].mxu1 }
 0x1e7   : > { %v1152_v33 = vadd.f32 %v2585_v5, %v830_v31  ;;  %v1184_v34 = vadd.f32 %v2585_v5, %v910_v32  ;;  %v832_v35 = vpop.f32.mrb[31].mxu0  ;;  %v912_v36 = vpop.f32.mrb[31].mxu1 }
 0x1e8   : > { %v1674_v37 = vpack.c.bf16 %v1151_v29, %v1150_v25  ;;  %v1690_v38 = vpack.c.bf16 %v1183_v30, %v1182_v26  ;;  %v1153_v39 = vadd.f32 %v2588_v6, %v832_v35  ;;  %v1185_v40 = vadd.f32 %v2588_v6, %v912_v36 }
 0x1ea   : > { %1392 = vst [vmem:[%s2600_s5 + $0x70] sm:$0xff] %v1674_v37  ;;  %1408 = vst [vmem:[%s2600_s5 + $0xf0] sm:$0xff] %v1690_v38  ;;  %v1675_v5 = vpack.c.bf16 %v1153_v39, %v1152_v33  ;;  %v1691_v41 = vpack.c.bf16 %v1185_v40, %v1184_v34 }
 0x1ec   : > { %1393 = vst [vmem:[%s2600_s5 + $0x78] sm:$0xff] %v1675_v5  ;;  %1409 = vst [vmem:[%s2600_s5 + $0xf8] sm:$0xff] %v1691_v41 }
 0x1ed   : > { %2020 = shalt.err (!%p2017_p1)
}
 0x1ee   : > { %s2021_s26 = scalar_lea.hbm %s2692_s1, 4096  ;;  %s2025_s27 = scalar_lea.hbm %s2836_s8, 49152 }
 0x1ef   : > { %p2022_p0 = scmp.ne.s32.totalorder %s2692_s1, %s2021_s26  ;;  %p2026_p8 = scmp.lt.u32.totalorder %s2692_s1, %s2836_s8 }
 0x1f0   : > { %p2027_p5 = scmp.lt.u32.totalorder %s2025_s27, %s2021_s26  ;;  %p2029_p2 = scmp.lt.u32.totalorder %s2021_s26, %s2692_s1 }
 0x1f1   : > { %p2023_p7 = pnand %p2022_p0, %p2837_p11 }
 0x1f2   : > { %p2028_p6 = por %p2027_p5, %p2026_p8 }
 0x1f3   : > { %p2024_p13 = pneg %p2023_p7 }
 0x1f4   : > { %p2030_p10 = por %p2029_p2, %p2028_p6 }
 0x1f6   : > { %p2031_p12 = pnand %p2030_p10, %p2024_p13 }
 0x1f8   : > { %2034 = shalt.err (!%p2031_p12)
}
 0x1f9   : > { %s2168_s5 = smov 128   ;;  %s2169_s10 = smov 384  }
 0x1fa   : > { %s2170_s24 = smov 8  }
 0x1fb   : > { %1731 = dma.vmem_to_hbm [thread:$0]  (%p2837_p11), %s2694_s21, 4096, %s2692_s1, %s2702_s22, %s2168_s5, %s2169_s10, %s2170_s24  }
 0x1fc PF: > { %s2838_s17 = sld [smem:[#allocation24_spill]]  ;;  %p1748_p3 = scmp.ge.s32.totalorder %s2157_s25, 2 }
 0x1fd   : > { %s1442_s6 = sand.u32 1, %s2105_s12  }
 0x1fe   : > { %s1443_s3 = scalar_lea.sflag [#allocation5], %s1442_s6 }
 0x202   : > { %p2839_p9 = scmp.ne.s32.totalorder %s2838_s17, 0 }
 0x204   : > { %p1744_p4 = pnand %p1748_p3, %p2839_p9 }
 0x206   : > { %2100 = dma.done.wait (!%p1744_p4), %s1443_s3, 4096  }
 0x207   : > { %2102 = vsyncadd (!%p1744_p4), %s1443_s3, 4294963200  ;;  %s22_s25 = sadd.s32 1, %s2157_s25   ;;  %s2841_s28 = sld [smem:[#allocation13_spill]] }
 0x208   : > { %p2731_p1 = scmp.ge.s32.totalorder %s22_s25, 14   ;;  %s2842_s14 = sld [smem:[#allocation23_spill]] }
 0x209   : > { %s2843_s21 = sld [smem:[#allocation14_spill]]  ;;  %s2844_s17 = sld [smem:[#allocation21_spill]] }
 0x20a   : > { %s2845_s1 = sld [smem:[#allocation15_spill]]  ;;  %s2846_s20 = sld [smem:[#allocation22_spill]] }
 0x20b   : > { %s2847_s22 = sld [smem:[#allocation18_spill]]  ;;  %s2848_s30 = sld [smem:[#allocation19_spill]] }
 0x20c   : > { %s2849_s24 = sld [smem:[#allocation20_spill]]  ;;  %s2850_s12 = smov %s2109_s13 }
 0x20d   : > { %s2851_s13 = smov %s2841_s28  ;;  %s2852_s15 = smov %s2121_s16 }
 0x20e   : > { %s2854_s18 = smov %s2133_s19  ;;  %21 = sbr.rel (!%p2731_p1) target bundleno = 16 (0x10), region = 109 }
 0x20f   : > { %s2853_s16 = smov %s2843_s21  ;;  %s2856_s21 = smov %s2149_s23 }
 0x210   : > { %s2855_s19 = smov %s2845_s1 }
 0x211   : > { %s2857_s23 = smov %s2848_s30 }
 0x215   :  { %1448 = vsyncpa [#allocation4], 1 }
 0x216   :  { %1450 = vsyncpa [#allocation4 + $0x1], 1 }
 0x217   :  { %1451 = vsyncpa [#allocation7], 1 }
 0x218   :  { %1453 = vsyncpa [#allocation7 + $0x1], 1 }
 0x219   :  { %1454 = vsyncpa [#allocation5], 1 }
 0x21a   :  { %1456 = vsyncpa [#allocation5 + $0x1], 1 }

</bundles_post_ra>
